<compile_context>
chip_gen: v7x
topology: tpu7x:2x2x1
jax: 0.10.0
libtpu: 0.0.40
codegen_flags: <defaults>
</compile_context>

<pallas_src>
import numpy as np
import jax
import jax.numpy as jnp
from jax.experimental import pallas as pl
from jax.experimental.pallas import tpu as pltpu


def _round_up(x, m):
    return (x + m - 1) // m * m


def critic_kernel(x_ref, w1cat_ref, bcol_ref, w2a_ref, w3_ref, b3_ref, out_ref):
    # x_ref:     (state+action, TB)   f32 activations (batch on lanes)
    # w1cat_ref: (fc1+fc2, state+action)  block matrix [[W1, 0], [0, W2b]]
    # bcol_ref:  (fc1+fc2, 1)         [b1 ; b2]
    # w2a_ref:   (fc2, fc1)           W2[:, :fc1]
    # w3_ref:    (fc2, 1)             W3 column
    # b3_ref:    (1, 1)               scalar in SMEM
    # out_ref:   (1, TB)              lane-dense output row
    mm_dtype = w1cat_ref.dtype
    fc1 = w2a_ref.shape[1]

    # In-kernel cast keeps DMA at the source dtype; no-op when f32.
    x = x_ref[...].astype(mm_dtype)

    # One MXU pass: rows 0:fc1 = fc1 pre-activation, rows fc1: = W2b @ x_a^T.
    p = jnp.dot(w1cat_ref[...], x, preferred_element_type=jnp.float32)
    p = p + bcol_ref[...]                                   # bias (b1|b2), f32

    h1 = jnp.maximum(p[:fc1, :], 0.0)                       # (fc1, TB)

    h2 = jnp.dot(w2a_ref[...], h1.astype(mm_dtype),
                 preferred_element_type=jnp.float32) + p[fc1:, :]
    h2 = jnp.maximum(h2, 0.0)                               # (fc2, TB)

    # fc3 head: VPU multiply + cross-sublane (XLU) reduce -> lane-dense row.
    out_ref[...] = (jnp.sum(h2 * w3_ref[...], axis=0, keepdims=True)
                    + b3_ref[0, 0])


def prepare_params(params, matmul_dtype=jnp.bfloat16):
    """One-time conversion of PyTorch-layout params to kernel layout.

    Run at parameter creation / after each optimizer update, NOT per forward
    call.  Builds the merged first-layer block weight, packed bias column,
    W2a, the W3 column, and the scalar b3.
    """
    w1 = jnp.asarray(params["w1"], jnp.float32)   # (fc1, state)
    w2 = jnp.asarray(params["w2"], jnp.float32)   # (fc2, fc1 + action)
    fc1, state_dim = w1.shape
    fc2 = w2.shape[0]
    action_dim = w2.shape[1] - fc1

    w2a = w2[:, :fc1]                             # (fc2, fc1)
    w2b = w2[:, fc1:]                             # (fc2, action)

    # Block matrix [[W1, 0], [0, W2b]]  -> (fc1+fc2, state+action)
    top = jnp.concatenate([w1, jnp.zeros((fc1, action_dim), jnp.float32)], axis=1)
    bot = jnp.concatenate([jnp.zeros((fc2, state_dim), jnp.float32), w2b], axis=1)
    w1cat = jnp.concatenate([top, bot], axis=0)

    return {
        "w1cat": w1cat.astype(matmul_dtype),                       # (fc1+fc2, S+A)
        "w2a":   w2a.astype(matmul_dtype),                         # (fc2, fc1)
        "bcol":  jnp.concatenate([jnp.asarray(params["b1"], jnp.float32),
                                  jnp.asarray(params["b2"], jnp.float32)]
                                 ).reshape(fc1 + fc2, 1),          # (fc1+fc2, 1)
        "w3col": jnp.asarray(params["w3"], jnp.float32).reshape(fc2, 1),
        "b3":    jnp.asarray(params["b3"], jnp.float32).reshape(1, 1),
        "dims":  (state_dim, action_dim, fc1, fc2),
    }


def critic_forward(x_s, x_a, kparams, *, batch_tile=4096, vmem_limit_bytes=None):
    """Critic forward pass as one Pallas kernel, gridded over the batch."""
    B, state_dim = x_s.shape
    _, action_dim = x_a.shape
    sd, ad, fc1, fc2 = kparams["dims"]
    assert (sd, ad) == (state_dim, action_dim)
    F = state_dim + action_dim
    nout = fc1 + fc2
    mm_itemsize = jnp.dtype(kparams["w1cat"].dtype).itemsize

    # Batch-on-lanes layout: one fused transpose/concat pass.  (Produce the
    # activations in this (F, B) layout upstream to remove it entirely.)
    xT = jnp.concatenate([x_s.T, x_a.T], axis=0)            # (F, B) f32

    # Batch tiling.  Small batches: one full-extent block (exempt from the
    # (8,128) rule).  Larger batches: lane tiles that are multiples of 128,
    # with >= 2 grid steps so both v7x TensorCores get work; the tail tile is
    # a partial edge block (no jnp.pad pass) and is sliced off below.
    if B <= 256:
        TB = B
    else:
        TB = min(batch_tile, _round_up(pl.cdiv(B, 2), 128))
    grid = pl.cdiv(B, TB)
    Bp = grid * TB

    cost = pl.CostEstimate(
        flops=2 * Bp * (F * nout + fc1 * fc2 + fc2),
        transcendentals=0,
        bytes_accessed=(Bp * F * 4 + Bp * 4
                        + (nout * F + fc2 * fc1) * mm_itemsize
                        + (nout + fc2 + 1) * 4),
    )

    out = pl.pallas_call(
        critic_kernel,
        out_shape=jax.ShapeDtypeStruct((1, Bp), jnp.float32),
        grid=(grid,),
        in_specs=[
            # batch-tiled activations (lane-dense)
            pl.BlockSpec((F, TB), lambda i: (0, i)),
            # weights / biases: constant index_map -> VMEM-resident across steps
            pl.BlockSpec((nout, F), lambda i: (0, 0)),
            pl.BlockSpec((nout, 1), lambda i: (0, 0)),
            pl.BlockSpec((fc2, fc1), lambda i: (0, 0)),
            pl.BlockSpec((fc2, 1), lambda i: (0, 0)),
            # fc3 bias: scalar in SMEM
            pl.BlockSpec(memory_space=pltpu.MemorySpace.SMEM),
        ],
        out_specs=pl.BlockSpec((1, TB), lambda i: (0, i)),
        compiler_params=pltpu.CompilerParams(
            dimension_semantics=("parallel",),
            vmem_limit_bytes=vmem_limit_bytes),
        cost_estimate=cost,
    )(xT, kparams["w1cat"], kparams["bcol"], kparams["w2a"],
      kparams["w3col"], kparams["b3"])

    return out[0, :B].reshape(B, 1)


def init_params(key, state_dim, action_dim, fc1_units=64, fc2_units=64):
    """PyTorch-convention (out,in) parameter layout for the Critic."""
    k1, k2, k3, k4, k5, k6 = jax.random.split(key, 6)
    v1 = 1.0 / np.sqrt(state_dim)
    v2 = 1.0 / np.sqrt(fc1_units + action_dim)
    return {
        "w1": jax.random.uniform(k1, (fc1_units, state_dim), jnp.float32, -v1, v1),
        "b1": jax.random.uniform(k2, (fc1_units,), jnp.float32, -v1, v1),
        "w2": jax.random.uniform(k3, (fc2_units, fc1_units + action_dim),
                                 jnp.float32, -v2, v2),
        "b2": jax.random.uniform(k4, (fc2_units,), jnp.float32, -v2, v2),
        "w3": jax.random.uniform(k5, (1, fc2_units), jnp.float32, -3e-3, 3e-3),
        "b3": jax.random.uniform(k6, (1,), jnp.float32, -3e-3, 3e-3),
    }


def critic_forward_ref(x_s, x_a, params):
    """Pure-JAX reference (mirrors the PyTorch forward exactly)."""
    h1 = jax.nn.relu(x_s @ params["w1"].T + params["b1"])
    h = jnp.concatenate([h1, x_a], axis=1)
    h2 = jax.nn.relu(h @ params["w2"].T + params["b2"])
    return h2 @ params["w3"].T + params["b3"]


if __name__ == "__main__":
    key = jax.random.PRNGKey(0)
    kp, ks1, ka1, ks2, ka2 = jax.random.split(key, 5)

    state_dim, action_dim = 8, 4
    params = init_params(kp, state_dim, action_dim, fc1_units=64, fc2_units=64)

    # f32 operands: bit-tight vs the f32 reference (small batch, single tile).
    kparams_f32 = prepare_params(params, matmul_dtype=jnp.float32)
    B = 2
    x_s = jax.random.normal(ks1, (B, state_dim), jnp.float32)
    x_a = jax.random.normal(ka1, (B, action_dim), jnp.float32)
    out = jax.block_until_ready(critic_forward(x_s, x_a, kparams_f32))
    ref = critic_forward_ref(x_s, x_a, params)
    np.testing.assert_allclose(np.asarray(out), np.asarray(ref),
                               rtol=1e-5, atol=1e-5)
    assert out.shape == (B, 1)

    # Gridded path (>1 batch tile, partial edge block), still f32-tight.
    B2 = 300
    x_s2 = jax.random.normal(ks2, (B2, state_dim), jnp.float32)
    x_a2 = jax.random.normal(ka2, (B2, action_dim), jnp.float32)
    out2 = jax.block_until_ready(critic_forward(x_s2, x_a2, kparams_f32))
    ref2 = critic_forward_ref(x_s2, x_a2, params)
    np.testing.assert_allclose(np.asarray(out2), np.asarray(ref2),
                               rtol=1e-5, atol=1e-5)

    # Default bf16 operands (f32 accumulation): loose tolerance vs f32 ref.
    kparams_bf16 = prepare_params(params)
    out3 = jax.block_until_ready(critic_forward(x_s2, x_a2, kparams_bf16))
    np.testing.assert_allclose(np.asarray(out3), np.asarray(ref2),
                               rtol=5e-2, atol=2e-2)

    print("KERNEL_OK")
</pallas_src>

<mosaic_0001>
module attributes {stable_mosaic.version = 11 : i64} {
  func.func @critic_kernel(%arg0: i32, %arg1: memref<12x2xf32, #tpu.memory_space<vmem>>, %arg2: memref<128x12xf32, #tpu.memory_space<vmem>>, %arg3: memref<128x1xf32, #tpu.memory_space<vmem>>, %arg4: memref<64x64xf32, #tpu.memory_space<vmem>>, %arg5: memref<64x1xf32, #tpu.memory_space<vmem>>, %arg6: memref<1x1xf32, #tpu.memory_space<smem>>, %arg7: memref<1x2xf32, #tpu.memory_space<vmem>>) attributes {dimension_semantics = [#tpu.dimension_semantics<parallel>], iteration_bounds = array<i64: 1>, scalar_prefetch = 0 : i64, scratch_operands = 0 : i64, tpu.core_type = #tpu.core_type<tc>, window_params = [{transform_indices = @transform_0, window_bounds = array<i64: 12, 2>}, {pipeline_mode = #tpu.pipeline_mode<synchronous>, transform_indices = @transform_1, window_bounds = array<i64: 128, 12>}, {pipeline_mode = #tpu.pipeline_mode<synchronous>, transform_indices = @transform_2, window_bounds = array<i64: 128, 1>}, {pipeline_mode = #tpu.pipeline_mode<synchronous>, transform_indices = @transform_3, window_bounds = array<i64: 64, 64>}, {pipeline_mode = #tpu.pipeline_mode<synchronous>, transform_indices = @transform_4, window_bounds = array<i64: 64, 1>}, {transform_indices = @transform_5, window_bounds = array<i64: 1, 1>}, {transform_indices = @transform_6, window_bounds = array<i64: 1, 2>}]} {
    %c0 = arith.constant 0 : index
    %c0_0 = arith.constant 0 : index
    %0 = vector.load %arg1[%c0, %c0_0] : memref<12x2xf32, #tpu.memory_space<vmem>>, vector<12x2xf32>
    %c0_1 = arith.constant 0 : index
    %c0_2 = arith.constant 0 : index
    %1 = vector.load %arg2[%c0_1, %c0_2] : memref<128x12xf32, #tpu.memory_space<vmem>>, vector<128x12xf32>
    %cst = arith.constant dense<0.000000e+00> : vector<128x2xf32>
    %2 = tpu.matmul %1, %0, %cst {dimension_numbers = #tpu.dot_dimension_numbers<[1], [0], [0], [1], [0, 0, 1, 1], [], []>} : vector<128x12xf32>, vector<12x2xf32>, vector<128x2xf32> -> vector<128x2xf32>
    %c0_3 = arith.constant 0 : index
    %c0_4 = arith.constant 0 : index
    %3 = vector.load %arg3[%c0_3, %c0_4] : memref<128x1xf32, #tpu.memory_space<vmem>>, vector<128x1xf32>
    %4 = vector.broadcast %3 : vector<128x1xf32> to vector<128x2xf32>
    %5 = arith.addf %2, %4 : vector<128x2xf32>
    %6 = vector.extract_strided_slice %5 {offsets = [0, 0], sizes = [64, 2], strides = [1, 1]} : vector<128x2xf32> to vector<64x2xf32>
    %cst_5 = arith.constant 0.000000e+00 : f32
    %7 = vector.broadcast %cst_5 : f32 to vector<64x2xf32>
    %8 = arith.maximumf %6, %7 : vector<64x2xf32>
    %c0_6 = arith.constant 0 : index
    %c0_7 = arith.constant 0 : index
    %9 = vector.load %arg4[%c0_6, %c0_7] : memref<64x64xf32, #tpu.memory_space<vmem>>, vector<64x64xf32>
    %cst_8 = arith.constant dense<0.000000e+00> : vector<64x2xf32>
    %10 = tpu.matmul %9, %8, %cst_8 {dimension_numbers = #tpu.dot_dimension_numbers<[1], [0], [0], [1], [0, 0, 1, 1], [], []>} : vector<64x64xf32>, vector<64x2xf32>, vector<64x2xf32> -> vector<64x2xf32>
    %11 = vector.extract_strided_slice %5 {offsets = [64, 0], sizes = [64, 2], strides = [1, 1]} : vector<128x2xf32> to vector<64x2xf32>
    %12 = arith.addf %10, %11 : vector<64x2xf32>
    %cst_9 = arith.constant 0.000000e+00 : f32
    %13 = vector.broadcast %cst_9 : f32 to vector<64x2xf32>
    %14 = arith.maximumf %12, %13 : vector<64x2xf32>
    %c0_10 = arith.constant 0 : index
    %c0_11 = arith.constant 0 : index
    %15 = vector.load %arg5[%c0_10, %c0_11] : memref<64x1xf32, #tpu.memory_space<vmem>>, vector<64x1xf32>
    %16 = vector.broadcast %15 : vector<64x1xf32> to vector<64x2xf32>
    %17 = arith.mulf %14, %16 : vector<64x2xf32>
    %cst_12 = arith.constant dense<0.000000e+00> : vector<2xf32>
    %18 = vector.multi_reduction <add>, %17, %cst_12 [0] : vector<64x2xf32> to vector<2xf32>
    %19 = vector.shape_cast %18 : vector<2xf32> to vector<1x2xf32>
    %c0_13 = arith.constant 0 : index
    %c0_14 = arith.constant 0 : index
    %20 = memref.load %arg6[%c0_13, %c0_14] : memref<1x1xf32, #tpu.memory_space<smem>>
    %21 = vector.broadcast %20 : f32 to vector<1x2xf32>
    %22 = arith.addf %19, %21 : vector<1x2xf32>
    %c0_15 = arith.constant 0 : index
    %c0_16 = arith.constant 0 : index
    %23 = vector.load %arg7[%c0_15, %c0_16] : memref<1x2xf32, #tpu.memory_space<vmem>>, vector<1x2xf32>
    tpu.vector_store %arg7[%c0_15, %c0_16], %22 {strides = array<i32>} : memref<1x2xf32, #tpu.memory_space<vmem>>, vector<1x2xf32>,
    return
  }
  func.func @transform_0(%arg0: i32) -> (i32, i32) {
    %c0_i32 = arith.constant 0 : i32
    %c0_i32_0 = arith.constant 0 : i32
    return %c0_i32, %arg0 : i32, i32
  }
  func.func @transform_1(%arg0: i32) -> (i32, i32) {
    %c0_i32 = arith.constant 0 : i32
    %c0_i32_0 = arith.constant 0 : i32
    %c0_i32_1 = arith.constant 0 : i32
    return %c0_i32, %c0_i32_0 : i32, i32
  }
  func.func @transform_2(%arg0: i32) -> (i32, i32) {
    %c0_i32 = arith.constant 0 : i32
    %c0_i32_0 = arith.constant 0 : i32
    %c0_i32_1 = arith.constant 0 : i32
    return %c0_i32, %c0_i32_0 : i32, i32
  }
  func.func @transform_3(%arg0: i32) -> (i32, i32) {
    %c0_i32 = arith.constant 0 : i32
    %c0_i32_0 = arith.constant 0 : i32
    %c0_i32_1 = arith.constant 0 : i32
    return %c0_i32, %c0_i32_0 : i32, i32
  }
  func.func @transform_4(%arg0: i32) -> (i32, i32) {
    %c0_i32 = arith.constant 0 : i32
    %c0_i32_0 = arith.constant 0 : i32
    %c0_i32_1 = arith.constant 0 : i32
    return %c0_i32, %c0_i32_0 : i32, i32
  }
  func.func @transform_5(%arg0: i32) -> (i32, i32) {
    %c0_i32 = arith.constant 0 : i32
    %c0_i32_0 = arith.constant 0 : i32
    %c0_i32_1 = arith.constant 0 : i32
    return %c0_i32, %c0_i32_0 : i32, i32
  }
  func.func @transform_6(%arg0: i32) -> (i32, i32) {
    %c0_i32 = arith.constant 0 : i32
    %c0_i32_0 = arith.constant 0 : i32
    return %c0_i32, %arg0 : i32, i32
  }
}

</mosaic_0001>

<bundles_post_ra>
// kernel: tpu_custom_call.1
= control target key start
LH: loop header
LB: loop body
LE: loop exit
PB: predicated region body
PF: predicated region fallthrough
CT: control target
= control target key end

     0   :  { %vm188_vm0 = vcmask 1043456   ;;  %vm770_vm1 = vmmov 1   ;;  %vm139_vm3 = vcmask 97280   ;;  %v771_v4 = vmov 0   ;;  %s1005_s0 = inlined_call_operand.vmem [shape: f32[12,2], index: 0, kind: input, shape index: {}]   ;;  %s1006_s1 = inlined_call_operand.vmem [shape: f32[128,12], index: 1, kind: input, shape index: {}]   ;;  %s1007_s2 = inlined_call_operand.vmem [shape: f32[128,1], index: 2, kind: input, shape index: {}]   ;;  %s1008_s3 = inlined_call_operand.vmem [shape: f32[64,64], index: 3, kind: input, shape index: {}]   ;;  %s1009_s4 = inlined_call_operand.vmem [shape: f32[64,1], index: 4, kind: input, shape index: {}]   ;;  %s1010_s5 = inlined_call_operand.<no memory space> [shape: f32[1,1], index: 5, kind: input, shape index: {}]   ;;  %s1011_s6 = inlined_call_operand.hbm [shape: f32[1,2], index: 6, kind: output, shape index: {}]  }
   0x1   :  { %v25_v0 = vld [vmem:[%s1005_s0] sm:$0xff]  ;;  %v26_v1 = vld [vmem:[%s1005_s0 + $0x8] sm:$0xf]  ;;  %vm704_vm2 = vmpackc.low %vm188_vm0, %vm770_vm1  ;;  %744 = vset.pattern.permute.xlu0 %v771_v4  ;;  %745 = vset.pattern.permute.xlu1 %v771_v4 }
   0x2   :  { %v27_v2 = vld [vmem:[%s1006_s1] sm:$0xff]  ;;  %v703_v3 = vpack.c.bf16 %v26_v1, %v25_v0  ;;  %v28_v5 = vld [vmem:[%s1006_s1 + $0x8] sm:$0xff]  ;;  %v29_v6 = vld [vmem:[%s1006_s1 + $0x10] sm:$0xff] }
   0x3   :  { %651 = vmatprep.mubr.msk.f32.mxu1 %vm139_vm3, %v27_v2  ;;  %v43_v7 = vld [vmem:[%s1007_s2] sm:$0xff]  ;;  %v45_v8 = vld [vmem:[%s1007_s2 + $0x10] sm:$0xff]  ;;  %v30_v9 = vld [vmem:[%s1006_s1 + $0x18] sm:$0xff] }
   0x4   :  { %705 = vmatprep.subr.msk.bf16.mxu1 %vm704_vm2, %v703_v3  ;;  %61 = vperm.xlu0 %744, %v43_v7   ;;  %v44_v10 = vld [vmem:[%s1007_s2 + $0x8] sm:$0xff]  ;;  %v31_v11 = vld [vmem:[%s1006_s1 + $0x20] sm:$0xff]  ;;  %v46_v12 = vld [vmem:[%s1007_s2 + $0x18] sm:$0xff] }
   0x5   :  { %708 = vmatpush3.bf16.msk.msra.mxu1 %vm704_vm2, %v703_v3  ;;  %71 = vperm.xlu1 %745, %v45_v8   ;;  %v32_v13 = vld [vmem:[%s1006_s1 + $0x28] sm:$0xff]  ;;  %v47_v14 = vld [vmem:[%s1007_s2 + $0x20] sm:$0xff]  ;;  %v33_v15 = vld [vmem:[%s1006_s1 + $0x30] sm:$0xff] }
   0x6   :  { %v48_v16 = vld [vmem:[%s1007_s2 + $0x28] sm:$0xff] }
   0x8   :  { %652 = vmatmul.mubr.msk.f32.vlgmr.msra.gmra.mrb[0].mxu1 %vm139_vm3, %v28_v5  ;;  %66 = vperm.xlu0 %744, %v44_v10  }
   0x9   :  { %654 = vmatprep.mubr.msk.f32.mxu1 %vm139_vm3, %v29_v6  ;;  %76 = vperm.xlu1 %745, %v46_v12  }
   0xc   :  { %655 = vmatmul.mubr.msk.f32.gmra.mrb[2].mxu1 %vm139_vm3, %v30_v9 }
   0xd   :  { %657 = vmatprep.mubr.msk.f32.mxu1 %vm139_vm3, %v31_v11 }
   0xe   :  { %12 = vsyncpa [#allocation4], 0  ;;  %81 = vperm.xlu0 %744, %v47_v14   ;;  %v34_v17 = vld [vmem:[%s1006_s1 + $0x38] sm:$0xff]  ;;  %86 = vperm.xlu1 %745, %v48_v16   ;;  %v49_v18 = vld [vmem:[%s1007_s2 + $0x30] sm:$0xff]  ;;  %vm353_vm4 = vcmask 523264   ;;  %vm547_vm5 = vcmask 15360  }
   0xf   :  { %v35_v19 = vld [vmem:[%s1006_s1 + $0x40] sm:$0xff]  ;;  %v50_v20 = vld [vmem:[%s1007_s2 + $0x38] sm:$0xff]  ;;  %v36_v21 = vld [vmem:[%s1006_s1 + $0x48] sm:$0xff]  ;;  %s772_s18 = smov [#allocation3]   ;;  %vm572_vm6 = vcmask 8192  }
  0x10   :  { %658 = vmatmul.mubr.msk.f32.gmra.mrb[4].mxu1 %vm139_vm3, %v32_v13  ;;  %v51_v22 = vld [vmem:[%s1007_s2 + $0x40] sm:$0xff]  ;;  %v37_v23 = vld [vmem:[%s1006_s1 + $0x50] sm:$0xff]  ;;  %v52_v24 = vld [vmem:[%s1007_s2 + $0x48] sm:$0xff]  ;;  %s580_s19 = sshll.u32 %s772_s18, 4  ;;  %s581_s19 = int_to_ptr.vmem [resolvable:$true] %s580_s19 }
  0x11   :  { %660 = vmatprep.mubr.msk.f32.mxu1 %vm139_vm3, %v33_v15  ;;  %v38_v25 = vld [vmem:[%s1006_s1 + $0x58] sm:$0xff]  ;;  %v53_v26 = vld [vmem:[%s1007_s2 + $0x50] sm:$0xff]  ;;  %v39_v27 = vld [vmem:[%s1006_s1 + $0x60] sm:$0xff]  ;;  %s746_s20 = scalar_lea.vmem %s581_s19, 16  ;;  %s750_s21 = scalar_lea.vmem %s581_s19, 32 }
  0x12   :  { %91 = vperm.xlu0 %744, %v49_v18   ;;  %96 = vperm.xlu1 %745, %v50_v20   ;;  %v54_v28 = vld [vmem:[%s1007_s2 + $0x58] sm:$0xff]  ;;  %v40_v29 = vld [vmem:[%s1006_s1 + $0x68] sm:$0xff]  ;;  %v55_v30 = vld [vmem:[%s1007_s2 + $0x60] sm:$0xff]  ;;  %p747_p0 = scmp.ne.s32.totalorder %s581_s19, %s746_s20  ;;  %p751_p1 = scmp.lt.s32.totalorder %s581_s19, %s581_s19 }
  0x13   :  { %v41_v31 = vld [vmem:[%s1006_s1 + $0x70] sm:$0xff]  ;;  %v491_v32 = vld [vmem:[%s1009_s4] sm:$0xff]  ;;  %v42_v33 = vld [vmem:[%s1006_s1 + $0x78] sm:$0xff]  ;;  %p752_p2 = scmp.lt.s32.totalorder %s750_s21, %s746_s20 }
  0x14   :  { %661 = vmatmul.mubr.msk.f32.gmra.mrb[6].mxu1 %vm139_vm3, %v34_v17  ;;  %v492_v34 = vld [vmem:[%s1009_s4 + $0x8] sm:$0xff]  ;;  %v493_v36 = vld [vmem:[%s1009_s4 + $0x10] sm:$0xff]  ;;  %v494_v38 = vld [vmem:[%s1009_s4 + $0x18] sm:$0xff] }
  0x15   :  { %663 = vmatprep.mubr.msk.f32.mxu1 %vm139_vm3, %v35_v19  ;;  %v56_v35 = vld [vmem:[%s1007_s2 + $0x68] sm:$0xff]  ;;  %v57_v37 = vld [vmem:[%s1007_s2 + $0x70] sm:$0xff]  ;;  %v58_v39 = vld [vmem:[%s1007_s2 + $0x78] sm:$0xff]  ;;  %p753_p3 = por %p752_p2, %p751_p1 }
  0x16   :  { %101 = vperm.xlu0 %744, %v51_v22   ;;  %106 = vperm.xlu1 %745, %v52_v24   ;;  %v495_v40 = vld [vmem:[%s1009_s4 + $0x20] sm:$0xff]  ;;  %v496_v41 = vld [vmem:[%s1009_s4 + $0x28] sm:$0xff]  ;;  %v497_v42 = vld [vmem:[%s1009_s4 + $0x30] sm:$0xff] }
  0x17   :  { %v498_v43 = vld [vmem:[%s1009_s4 + $0x38] sm:$0xff]  ;;  %v345_v44 = vld [vmem:[%s1008_s3] sm:$0xff]  ;;  %v347_v22 = vld [vmem:[%s1008_s3 + $0x10] sm:$0xff]  ;;  %p754_p4 = pnand %p753_p3, %p747_p0 }
  0x18   :  { %664 = vmatmul.mubr.msk.f32.gmra.mrb[8].mxu1 %vm139_vm3, %v36_v21  ;;  %691 = vmatprep.mubr.msk.f32.mxu0 %vm353_vm4, %v345_v44  ;;  %v346_v21 = vld [vmem:[%s1008_s3 + $0x8] sm:$0xff] }
  0x19   :  { %666 = vmatprep.mubr.msk.f32.mxu1 %vm139_vm3, %v37_v23 }
  0x1a   :  { %111 = vperm.xlu0 %744, %v53_v26   ;;  %116 = vperm.xlu1 %745, %v54_v28   ;;  %v349_v26 = vld [vmem:[%s1008_s3 + $0x20] sm:$0xff] }
  0x1c   :  { %667 = vmatmul.mubr.msk.f32.gmra.mrb[10].mxu1 %vm139_vm3, %v38_v25  ;;  %v348_v25 = vld [vmem:[%s1008_s3 + $0x18] sm:$0xff] }
  0x1d   :  { %669 = vmatprep.mubr.msk.f32.mxu1 %vm139_vm3, %v39_v27 }
  0x1e   :  { %121 = vperm.xlu0 %744, %v55_v30   ;;  %501 = vperm.xlu1 %745, %v491_v32   ;;  %v351_v30 = vld [vmem:[%s1008_s3 + $0x30] sm:$0xff] }
  0x20   :  { %670 = vmatmul.mubr.msk.f32.gmra.mrb[12].mxu1 %vm139_vm3, %v40_v29  ;;  %v350_v29 = vld [vmem:[%s1008_s3 + $0x28] sm:$0xff] }
  0x21   :  { %672 = vmatprep.mubr.msk.f32.mxu1 %vm139_vm3, %v41_v31  ;;  %v352_v31 = vld [vmem:[%s1008_s3 + $0x38] sm:$0xff] }
  0x22   :  { %506 = vperm.xlu0 %744, %v492_v34   ;;  %126 = vperm.xlu1 %745, %v56_v35  }
  0x24   :  { %673 = vmatmul.mubr.msk.f32.gmra.mrb[14].mxu1 %vm139_vm3, %v42_v33 }
  0x26   :  { %511 = vperm.xlu0 %744, %v493_v36   ;;  %131 = vperm.xlu1 %745, %v57_v37  }
  0x2a   :  { %516 = vperm.xlu0 %744, %v494_v38   ;;  %136 = vperm.xlu1 %745, %v58_v39  }
  0x2e   :  { %521 = vperm.xlu0 %744, %v495_v40   ;;  %526 = vperm.xlu1 %745, %v496_v41  }
  0x32   :  { %531 = vperm.xlu0 %744, %v497_v42   ;;  %536 = vperm.xlu1 %745, %v498_v43  }
  0x83   :  { %v62_v45 = vpop.permute.xlu0 %61 }
  0x84   :  { %v72_v46 = vpop.permute.xlu1 %71 }
  0x87   :  { %v67_v47 = vpop.permute.xlu0 %66 }
  0x88   :  { %v77_v48 = vpop.permute.xlu1 %76 }
  0x8d   :  { %v87_v58 = vpop.permute.xlu1 %86  ;;  %v82_v61 = vpop.permute.xlu0 %81 }
  0x91   :  { %v97_v6 = vpop.permute.xlu1 %96  ;;  %v92_v9 = vpop.permute.xlu0 %91 }
  0x95   :  { %v102_v32 = vpop.permute.xlu0 %101  ;;  %v107_v33 = vpop.permute.xlu1 %106 }
  0x99   :  { %v112_v34 = vpop.permute.xlu0 %111  ;;  %v117_v35 = vpop.permute.xlu1 %116 }
  0x9d   :  { %v122_v36 = vpop.permute.xlu0 %121  ;;  %v502_v37 = vpop.permute.xlu1 %501 }
  0xa1   :  { %v507_v38 = vpop.permute.xlu0 %506  ;;  %v127_v39 = vpop.permute.xlu1 %126 }
  0xa5   :  { %v512_v40 = vpop.permute.xlu0 %511  ;;  %v132_v41 = vpop.permute.xlu1 %131 }
  0xdb   :  { %v653_v49 = vpop.f32.mrb[0].mxu1 }
  0xdc   :  { %v264_v50 = vadd.f32 %v653_v49, %v67_v47  ;;  %v258_v51 = vpop.f32.mrb[1].mxu1 }
  0xdd   :  { %v259_v52 = vadd.f32 %v258_v51, %v62_v45 }
  0xde   :  { %v338_v53 = vmax.f32 %v264_v50, 0.0  ;;  %v517_v50 = vpop.permute.xlu0 %516 }
  0xdf   :  { %v337_v54 = vmax.f32 %v259_v52, 0.0  ;;  %v656_v55 = vpop.f32.mrb[2].mxu1 }
  0xe0   :  { %v274_v56 = vadd.f32 %v656_v55, %v77_v48  ;;  %v268_v57 = vpop.f32.mrb[3].mxu1 }
  0xe1   :  { %v269_v59 = vadd.f32 %v268_v57, %v72_v46  ;;  %v709_v60 = vpack.c.bf16 %v338_v53, %v337_v54  ;;  %v137_v54 = vpop.permute.xlu1 %136 }
  0xe2   :  { %v340_v62 = vmax.f32 %v274_v56, 0.0 }
  0xe3   :  { %v339_v63 = vmax.f32 %v269_v59, 0.0  ;;  %v659_v0 = vpop.f32.mrb[4].mxu1  ;;  %710 = vmatprep.subr.bf16.mxu0 %v709_v60 }
  0xe4   :  { %v284_v1 = vadd.f32 %v659_v0, %v87_v58  ;;  %v278_v2 = vpop.f32.mrb[5].mxu1  ;;  %712 = vmatpush3.bf16.msra.mxu0 %v709_v60 }
  0xe5   :  { %v713_v3 = vpack.c.bf16 %v340_v62, %v339_v63  ;;  %v279_v4 = vadd.f32 %v278_v2, %v82_v61 }
  0xe6   :  { %v342_v5 = vmax.f32 %v284_v1, 0.0 }
  0xe7   :  { %v341_v7 = vmax.f32 %v279_v4, 0.0  ;;  %v662_v8 = vpop.f32.mrb[6].mxu1  ;;  %714 = vmatprep.subr.bf16.mxu0 %v713_v3 }
  0xe8   :  { %v294_v10 = vadd.f32 %v662_v8, %v97_v6  ;;  %v288_v11 = vpop.f32.mrb[7].mxu1  ;;  %716 = vmatpush3.bf16.msra.mxu0 %v713_v3 }
  0xe9   :  { %v717_v12 = vpack.c.bf16 %v342_v5, %v341_v7  ;;  %v289_v13 = vadd.f32 %v288_v11, %v92_v9  ;;  %v522_v9 = vpop.permute.xlu0 %521 }
  0xea   :  { %v344_v14 = vmax.f32 %v294_v10, 0.0  ;;  %v527_v10 = vpop.permute.xlu1 %526 }
  0xeb   :  { %v343_v15 = vmax.f32 %v289_v13, 0.0  ;;  %v665_v16 = vpop.f32.mrb[8].mxu1  ;;  %718 = vmatprep.subr.bf16.mxu0 %v717_v12 }
  0xec   :  { %v298_v17 = vpop.f32.mrb[9].mxu1  ;;  %720 = vmatpush3.bf16.msra.mxu0 %v717_v12  ;;  %v304_v42 = vadd.f32 %v665_v16, %v107_v33 }
  0xed   :  { %v721_v18 = vpack.c.bf16 %v344_v14, %v343_v15  ;;  %v299_v43 = vadd.f32 %v298_v17, %v102_v32 }
  0xef   :  { %v668_v19 = vpop.f32.mrb[10].mxu1  ;;  %722 = vmatprep.subr.bf16.mxu0 %v721_v18 }
  0xf0   :  { %v308_v20 = vpop.f32.mrb[11].mxu1  ;;  %724 = vmatpush3.bf16.msra.mxu0 %v721_v18  ;;  %v314_v48 = vadd.f32 %v668_v19, %v117_v35 }
  0xf1   :  { %v309_v51 = vadd.f32 %v308_v20, %v112_v34 }
  0xf3   :  { %v671_v23 = vpop.f32.mrb[12].mxu1  ;;  %692 = vmatmul.mubr.msk.f32.vlgmr.msra.gmra.mrb[0].mxu0 %vm353_vm4, %v346_v21 }
  0xf4   :  { %v318_v24 = vpop.f32.mrb[13].mxu1  ;;  %694 = vmatprep.mubr.msk.f32.mxu0 %vm353_vm4, %v347_v22  ;;  %v324_v60 = vadd.f32 %v671_v23, %v127_v39 }
  0xf5   :  { %v319_v63 = vadd.f32 %v318_v24, %v122_v36 }
  0xf7   :  { %v674_v27 = vpop.f32.mrb[14].mxu1  ;;  %695 = vmatmul.mubr.msk.f32.gmra.mrb[2].mxu0 %vm353_vm4, %v348_v25 }
  0xf8   :  { %v328_v28 = vpop.f32.mrb[15].mxu1  ;;  %697 = vmatprep.mubr.msk.f32.mxu0 %vm353_vm4, %v349_v26  ;;  %v334_v11 = vadd.f32 %v674_v27, %v137_v54  ;;  %v532_v27 = vpop.permute.xlu0 %531 }
  0xf9   :  { %v329_v13 = vadd.f32 %v328_v28, %v132_v41 }
  0xfb   :  { %698 = vmatmul.mubr.msk.f32.gmra.mrb[4].mxu0 %vm353_vm4, %v350_v29 }
  0xfc   :  { %700 = vmatprep.mubr.msk.f32.mxu0 %vm353_vm4, %v351_v30  ;;  %v537_v30 = vpop.permute.xlu1 %536 }
  0xff   :  { %701 = vmatmul.mubr.msk.f32.gmra.mrb[6].mxu0 %vm353_vm4, %v352_v31 }
 0x1c6   :  { %v693_v44 = vpop.f32.mrb[0].mxu0 }
 0x1c7   :  { %v450_v45 = vadd.f32 %v693_v44, %v304_v42  ;;  %v444_v46 = vpop.f32.mrb[1].mxu0  ;;  %v570_v44 = vstv %s1010_s5 }
 0x1c8   :  { %v445_v47 = vadd.f32 %v444_v46, %v299_v43 }
 0x1c9   :  { %v484_v49 = vmax.f32 %v450_v45, 0.0 }
 0x1ca   :  { %v483_v52 = vmax.f32 %v445_v47, 0.0  ;;  %v696_v53 = vpop.f32.mrb[2].mxu0 }
 0x1cb   :  { %v540_v55 = vmul.f32 %v507_v38, %v484_v49  ;;  %v460_v56 = vadd.f32 %v696_v53, %v314_v48  ;;  %v454_v57 = vpop.f32.mrb[3].mxu0 }
 0x1cc   :  { %v539_v58 = vmul.f32 %v502_v37, %v483_v52  ;;  %v455_v59 = vadd.f32 %v454_v57, %v309_v51 }
 0x1cd   :  { %v549_v61 = vsel %vm547_vm5, %v540_v55, 0.0  ;;  %v486_v62 = vmax.f32 %v460_v56, 0.0 }
 0x1ce   :  { %v548_v0 = vsel %vm547_vm5, %v539_v58, 0.0  ;;  %v485_v1 = vmax.f32 %v455_v59, 0.0  ;;  %v699_v2 = vpop.f32.mrb[4].mxu0 }
 0x1cf   :  { %v550_v3 = vadd.f32 %v549_v61, %v548_v0  ;;  %v470_v4 = vadd.f32 %v699_v2, %v324_v60  ;;  %v464_v5 = vpop.f32.mrb[5].mxu0  ;;  %v542_v6 = vmul.f32 %v517_v50, %v486_v62 }
 0x1d0   :  { %v541_v7 = vmul.f32 %v512_v40, %v485_v1  ;;  %v465_v8 = vadd.f32 %v464_v5, %v319_v63 }
 0x1d1   :  { %v488_v12 = vmax.f32 %v470_v4, 0.0  ;;  %v553_v20 = vsel %vm547_vm5, %v542_v6, 0.0 }
 0x1d2   :  { %v551_v14 = vsel %vm547_vm5, %v541_v7, 0.0  ;;  %v487_v15 = vmax.f32 %v465_v8, 0.0  ;;  %v702_v16 = vpop.f32.mrb[6].mxu0 }
 0x1d3   :  { %v552_v17 = vadd.f32 %v551_v14, %v550_v3  ;;  %v480_v18 = vadd.f32 %v702_v16, %v334_v11  ;;  %v474_v19 = vpop.f32.mrb[7].mxu0  ;;  %v544_v21 = vmul.f32 %v527_v10, %v488_v12 }
 0x1d4   :  { %v543_v22 = vmul.f32 %v522_v9, %v487_v15  ;;  %v475_v23 = vadd.f32 %v474_v19, %v329_v13 }
 0x1d5   :  { %v554_v24 = vadd.f32 %v553_v20, %v552_v17  ;;  %v490_v25 = vmax.f32 %v480_v18, 0.0  ;;  %v557_v31 = vsel %vm547_vm5, %v544_v21, 0.0 }
 0x1d6   :  { %v555_v26 = vsel %vm547_vm5, %v543_v22, 0.0  ;;  %v489_v29 = vmax.f32 %v475_v23, 0.0 }
 0x1d7   :  { %v556_v28 = vadd.f32 %v555_v26, %v554_v24  ;;  %v546_v32 = vmul.f32 %v537_v30, %v490_v25 }
 0x1d8   :  { %v545_v33 = vmul.f32 %v532_v27, %v489_v29 }
 0x1d9   :  { %v558_v34 = vadd.f32 %v557_v31, %v556_v28  ;;  %v561_v37 = vsel %vm547_vm5, %v546_v32, 0.0 }
 0x1da   :  { %v559_v35 = vsel %vm547_vm5, %v545_v33, 0.0 }
 0x1db   :  { %v560_v36 = vadd.f32 %v559_v35, %v558_v34 }
 0x1dd   :  { %v562_v38 = vadd.f32 %v561_v37, %v560_v36 }
 0x1df   :  { %v563_v39 = vrot.slane %v562_v38, 4 }
 0x1e1   :  { %v564_v40 = vadd.f32 %v563_v39, %v562_v38 }
 0x1e3   :  { %v565_v41 = vrot.slane %v564_v40, 2 }
 0x1e5   :  { %v566_v42 = vadd.f32 %v565_v41, %v564_v40 }
 0x1e7   :  { %v567_v43 = vrot.slane %v566_v42, 1 }
 0x1e9   :  { %v568_v45 = vadd.f32 %v567_v43, %v566_v42 }
 0x1eb   :  { %v571_v46 = vadd.f32 %v570_v44, %v568_v45 }
 0x1ed   :  { %573 = vst.msk [vmem:[#allocation3] sm:$0x1] %vm572_vm6, %v571_v46 }
 0x1ee   :  { %757 = shalt.err (!%p754_p4)
}
 0x1ef   :  { %s758_s24 = scalar_lea.hbm %s1011_s6, 16 }
 0x1f0   :  { %p759_p5 = scmp.ne.s32.totalorder %s1011_s6, %s758_s24  ;;  %p762_p6 = scmp.lt.u32.totalorder %s758_s24, %s1011_s6 }
 0x1f2   :  { %p764_p7 = pnand %p762_p6, %p759_p5 }
 0x1f4   :  { %767 = shalt.err (!%p764_p7)
}
 0x1f5   :  { %583 = dma.vmem_to_hbm [thread:$0]  %s581_s19, 16, %s1011_s6, [#allocation4]  }
 0x1f6   :  { %768 = dma.done.wait [#allocation4], 16  }
 0x1f7   :  { %769 = vsyncadd [#allocation4], 4294967280 }
 0x1f8   :  { %587 = vsyncpa [#allocation4], 1 }

</bundles_post_ra>
